<compile_context>
chip_gen: v5e
topology: v5e:2x2
jax: 0.10.0
libtpu: 0.0.40
codegen_flags: <defaults>
</compile_context>

<pallas_src>
import functools

import jax
import jax.numpy as jnp
from jax.experimental import pallas as pl
from jax.experimental.pallas import tpu as pltpu

_LANES = 128
_SUBLANES = 8


def _round_up(v, m):
    return ((v + m - 1) // m) * m


def _linear_softmax_kernel(x_ref, w_ref, b_ref, o_ref):
    # x_ref: (TM, F) bf16   w_ref: (F, C_pad) bf16   b_ref: (1, C_pad) f32
    # o_ref: (TM, C_pad) f32
    logits = jnp.dot(x_ref[...], w_ref[...], preferred_element_type=jnp.float32)
    logits = logits + b_ref[...]          # padded class lanes hold -1e30 -> exp ~ 0
    m = jnp.max(logits, axis=-1, keepdims=True)
    e = jnp.exp(logits - m)
    denom = jnp.sum(e, axis=-1, keepdims=True)
    o_ref[...] = (e * pl.reciprocal(denom, approx=False)).astype(o_ref.dtype)


def prepare_params(weight, bias):
    """One-time parameter prep, hoisted out of the per-call forward path.

    weight: (num_classes, F) f32, bias: (num_classes,) f32.
    Returns:
      w_p: (F, C_pad) bf16 -- transposed weight, zero-padded class lanes.
      b_p: (1, C_pad) f32  -- bias with -1e30 on the padded lanes.
    """
    num_classes, f_dim = weight.shape
    c_pad = _round_up(max(num_classes, _LANES), _LANES)
    w_p = jnp.zeros((f_dim, c_pad), jnp.bfloat16)
    w_p = w_p.at[:, :num_classes].set(jnp.transpose(weight).astype(jnp.bfloat16))
    b_p = jnp.full((1, c_pad), -1e30, jnp.float32)
    b_p = b_p.at[0, :num_classes].set(bias.astype(jnp.float32))
    return w_p, b_p


@functools.partial(jax.jit, static_argnames=("num_classes",))
def classifier_forward(x, w_p, b_p, *, num_classes):
    """x: (B, C, H, W). w_p: (F, C_pad) bf16. b_p: (1, C_pad) f32."""
    B = x.shape[0]
    f_dim = w_p.shape[0]
    c_pad = w_p.shape[1]

    # Flatten exactly like torch.nn.Flatten (row-major over C, H, W); cast the
    # activations to bf16 for the MXU (accumulation is f32 inside the kernel).
    x2d = x.reshape(B, f_dim).astype(jnp.bfloat16)

    # Pad rows to a sublane multiple; tile the batch at 128 rows when large.
    tm = 128
    b_pad = _round_up(max(B, _SUBLANES), _SUBLANES)
    if b_pad < tm:
        tm = b_pad
    else:
        b_pad = _round_up(b_pad, tm)
    if b_pad != B:
        x2d = jnp.pad(x2d, ((0, b_pad - B), (0, 0)))

    out_padded = pl.pallas_call(
        _linear_softmax_kernel,
        out_shape=jax.ShapeDtypeStruct((b_pad, c_pad), jnp.float32),
        grid=(b_pad // tm,),
        in_specs=[
            pl.BlockSpec((tm, f_dim), lambda i: (i, 0)),     # row tile of x
            pl.BlockSpec((f_dim, c_pad), lambda i: (0, 0)),  # weight stays resident
            pl.BlockSpec((1, c_pad), lambda i: (0, 0)),      # bias stays resident
        ],
        out_specs=pl.BlockSpec((tm, c_pad), lambda i: (i, 0)),
        compiler_params=pltpu.CompilerParams(
            dimension_semantics=("parallel",)),
    )(x2d, w_p, b_p)

    return out_padded[:B, :num_classes]


if __name__ == "__main__":
    # Module defaults: num_classes=221, num_filters=8, input_shape=(180, 50, 3)
    # => Linear in_features = 32*8*(180//32)*(50//32) = 256*5*1 = 1280.
    num_classes = 221
    C, H, W = 256, 5, 1          # channels/spatial consistent with in_features=1280
    B = 2
    F = C * H * W

    key = jax.random.PRNGKey(0)
    kx, kw, kb = jax.random.split(key, 3)

    x = jax.random.normal(kx, (B, C, H, W), dtype=jnp.float32)

    # Deterministic init matching torch.nn.Linear's U(-1/sqrt(F), 1/sqrt(F)).
    bound = 1.0 / float(F) ** 0.5
    weight = jax.random.uniform(kw, (num_classes, F), jnp.float32, -bound, bound)
    bias = jax.random.uniform(kb, (num_classes,), jnp.float32, -bound, bound)

    # One-time parameter prep (not part of the per-call forward path).
    w_p, b_p = prepare_params(weight, bias)
    w_p = jax.block_until_ready(w_p)
    b_p = jax.block_until_ready(b_p)

    out = classifier_forward(x, w_p, b_p, num_classes=num_classes)
    out = jax.block_until_ready(out)

    # Reference 1: same bf16-matmul precision (checks the Pallas lowering).
    logits_bf16 = jnp.dot(
        x.reshape(B, F).astype(jnp.bfloat16),
        weight.T.astype(jnp.bfloat16),
        preferred_element_type=jnp.float32,
    ) + bias
    ref_bf16 = jax.nn.softmax(logits_bf16, axis=1)
    # Reference 2: full-f32 module semantics (tolerance covers bf16 quantization).
    ref_f32 = jax.nn.softmax(x.reshape(B, F) @ weight.T + bias, axis=1)

    assert out.shape == (B, num_classes)
    assert jnp.allclose(out, ref_bf16, atol=1e-5, rtol=1e-5)
    assert jnp.allclose(out, ref_f32, atol=2e-3, rtol=2e-2)
    assert jnp.allclose(jnp.sum(out, axis=1), 1.0, atol=1e-5)

    print("KERNEL_OK")
</pallas_src>

<mosaic_0001>
module attributes {stable_mosaic.version = 11 : i64} {
  func.func @_linear_softmax_kernel(%arg0: i32, %arg1: memref<8x1280xbf16, #tpu.memory_space<vmem>>, %arg2: memref<1280x256xbf16, #tpu.memory_space<vmem>>, %arg3: memref<1x256xf32, #tpu.memory_space<vmem>>, %arg4: memref<8x256xf32, #tpu.memory_space<vmem>>) attributes {dimension_semantics = [#tpu.dimension_semantics<parallel>], iteration_bounds = array<i64: 1>, scalar_prefetch = 0 : i64, scratch_operands = 0 : i64, tpu.core_type = #tpu.core_type<tc>, window_params = [{transform_indices = @transform_0, window_bounds = array<i64: 8, 1280>}, {pipeline_mode = #tpu.pipeline_mode<synchronous>, transform_indices = @transform_1, window_bounds = array<i64: 1280, 256>}, {pipeline_mode = #tpu.pipeline_mode<synchronous>, transform_indices = @transform_2, window_bounds = array<i64: 1, 256>}, {transform_indices = @transform_3, window_bounds = array<i64: 8, 256>}]} {
    %c0 = arith.constant 0 : index
    %c0_0 = arith.constant 0 : index
    %0 = vector.load %arg1[%c0, %c0_0] : memref<8x1280xbf16, #tpu.memory_space<vmem>>, vector<8x1280xbf16>
    %c0_1 = arith.constant 0 : index
    %c0_2 = arith.constant 0 : index
    %1 = vector.load %arg2[%c0_1, %c0_2] : memref<1280x256xbf16, #tpu.memory_space<vmem>>, vector<1280x256xbf16>
    %cst = arith.constant dense<0.000000e+00> : vector<8x256xf32>
    %2 = tpu.matmul %0, %1, %cst {dimension_numbers = #tpu.dot_dimension_numbers<[1], [0], [0], [1], [0, 0, 1, 1], [], []>} : vector<8x1280xbf16>, vector<1280x256xbf16>, vector<8x256xf32> -> vector<8x256xf32>
    %c0_3 = arith.constant 0 : index
    %c0_4 = arith.constant 0 : index
    %3 = vector.load %arg3[%c0_3, %c0_4] : memref<1x256xf32, #tpu.memory_space<vmem>>, vector<1x256xf32>
    %4 = vector.broadcast %3 : vector<1x256xf32> to vector<8x256xf32>
    %5 = arith.addf %2, %4 : vector<8x256xf32>
    %cst_5 = arith.constant dense<0xFF800000> : vector<8xf32>
    %6 = vector.multi_reduction <maximumf>, %5, %cst_5 [1] : vector<8x256xf32> to vector<8xf32>
    %7 = vector.shape_cast %6 : vector<8xf32> to vector<8x1xf32>
    %8 = vector.broadcast %7 : vector<8x1xf32> to vector<8x256xf32>
    %9 = arith.subf %5, %8 : vector<8x256xf32>
    %10 = math.exp %9 : vector<8x256xf32>
    %cst_6 = arith.constant dense<0.000000e+00> : vector<8xf32>
    %11 = vector.multi_reduction <add>, %10, %cst_6 [1] : vector<8x256xf32> to vector<8xf32>
    %12 = vector.shape_cast %11 : vector<8xf32> to vector<8x1xf32>
    %13 = tpu.reciprocal %12 : vector<8x1xf32> -> vector<8x1xf32>
    %14 = vector.broadcast %13 : vector<8x1xf32> to vector<8x256xf32>
    %15 = arith.mulf %10, %14 : vector<8x256xf32>
    %c0_7 = arith.constant 0 : index
    %c0_8 = arith.constant 0 : index
    %16 = vector.load %arg4[%c0_7, %c0_8] : memref<8x256xf32, #tpu.memory_space<vmem>>, vector<8x256xf32>
    tpu.vector_store %arg4[%c0_7, %c0_8], %15 {strides = array<i32>} : memref<8x256xf32, #tpu.memory_space<vmem>>, vector<8x256xf32>,
    return
  }
  func.func @transform_0(%arg0: i32) -> (i32, i32) {
    %c0_i32 = arith.constant 0 : i32
    %c0_i32_0 = arith.constant 0 : i32
    return %arg0, %c0_i32 : i32, i32
  }
  func.func @transform_1(%arg0: i32) -> (i32, i32) {
    %c0_i32 = arith.constant 0 : i32
    %c0_i32_0 = arith.constant 0 : i32
    %c0_i32_1 = arith.constant 0 : i32
    return %c0_i32, %c0_i32_0 : i32, i32
  }
  func.func @transform_2(%arg0: i32) -> (i32, i32) {
    %c0_i32 = arith.constant 0 : i32
    %c0_i32_0 = arith.constant 0 : i32
    %c0_i32_1 = arith.constant 0 : i32
    return %c0_i32, %c0_i32_0 : i32, i32
  }
  func.func @transform_3(%arg0: i32) -> (i32, i32) {
    %c0_i32 = arith.constant 0 : i32
    %c0_i32_0 = arith.constant 0 : i32
    return %arg0, %c0_i32 : i32, i32
  }
}

</mosaic_0001>

<bundles_post_ra>
// kernel: classifier_forward.1
= control target key start
LH: loop header
LB: loop body
LE: loop exit
PB: predicated region body
PF: predicated region fallthrough
CT: control target
= control target key end

     0   :  { %8 = vsyncpa [#allocation3], 0  ;;  %s2166_s15 = smov [#allocation2]   ;;  %s2167_s17 = smov 128   ;;  %s2256_s0 = inlined_call_operand.vmem [shape: bf16[8,1280], index: 0, kind: input, shape index: {}]   ;;  %s2257_s1 = inlined_call_operand.hbm [shape: bf16[1280,256], index: 1, kind: input, shape index: {}]   ;;  %s2258_s2 = inlined_call_operand.vmem [shape: f32[1,256], index: 2, kind: input, shape index: {}]   ;;  %s2259_s3 = inlined_call_operand.vmem [shape: f32[8,256], index: 3, kind: output, shape index: {}]  }
   0x1   :  { %s15_s14 = sshll.u32 %s2257_s1, 4  ;;  %s17_s16 = sshll.u32 %s2166_s15, 4  ;;  %s16_s14 = int_to_ptr.hbm [resolvable:$true] %s15_s14  ;;  %s18_s16 = int_to_ptr.vmem [resolvable:$true] %s17_s16 }
   0x2   :  { %s2168_s18 = smov 8  }
   0x3   :  { %23 = dma.hbm_to_vmem [thread:$0]  %s16_s14, 20480, %s18_s16, [#allocation3], %s2167_s17, %s2167_s17, %s2168_s18  }
   0x4   :  { %2164 = dma.done.wait [#allocation3], 20480  }
   0x5   :  { %2165 = vsyncadd [#allocation3], 4294946816  ;;  %v1389_v0 = vld [vmem:[#allocation2 + $0x70] sm:$0xf]  ;;  %v1986_v1 = vld [vmem:[#allocation2 + $0x74] sm:$0xf0] }
   0x6   :  { %v1453_v2 = vld [vmem:[#allocation2 + $0xf0] sm:$0xf]  ;;  %v1390_v3 = vor.u32 %v1986_v1, %v1389_v0  ;;  %v2002_v4 = vld [vmem:[#allocation2 + $0xf4] sm:$0xf0]  ;;  %v1381_v11 = vld [vmem:[#allocation2 + $0x60] sm:$0xf] }
   0x7   :  { %v1517_v5 = vld [vmem:[#allocation2 + $0x170] sm:$0xf]  ;;  %v2018_v6 = vld [vmem:[#allocation2 + $0x174] sm:$0xf0]  ;;  %v1454_v7 = vor.u32 %v2002_v4, %v1453_v2  ;;  %v1984_v13 = vld [vmem:[#allocation2 + $0x64] sm:$0xf0] }
   0x8   :  { %v1518_v8 = vor.u32 %v2018_v6, %v1517_v5  ;;  %v1581_v9 = vld [vmem:[#allocation2 + $0x1f0] sm:$0xf]  ;;  %v2034_v10 = vld [vmem:[#allocation2 + $0x1f4] sm:$0xf0]  ;;  %1036 = vmatpush.bf16.msra.mxu0 %v1390_v3  ;;  %v1445_v14 = vld [vmem:[#allocation2 + $0xe0] sm:$0xf]  ;;  %v1382_v16 = vor.u32 %v1984_v13, %v1381_v11 }
   0x9   :  { %v1582_v12 = vor.u32 %v2034_v10, %v1581_v9  ;;  %v2000_v15 = vld [vmem:[#allocation2 + $0xe4] sm:$0xf0]  ;;  %1049 = vmatpush.bf16.msra.mxu1 %v1454_v7  ;;  %v1509_v18 = vld [vmem:[#allocation2 + $0x160] sm:$0xf]  ;;  %v1373_v23 = vld [vmem:[#allocation2 + $0x50] sm:$0xf] }
   0xa   :  { %1062 = vmatpush.bf16.msra.mxu2 %v1518_v8  ;;  %v1446_v17 = vor.u32 %v2000_v15, %v1445_v14  ;;  %v2016_v19 = vld [vmem:[#allocation2 + $0x164] sm:$0xf0]  ;;  %v1573_v20 = vld [vmem:[#allocation2 + $0x1e0] sm:$0xf]  ;;  %v1982_v24 = vld [vmem:[#allocation2 + $0x54] sm:$0xf0] }
   0xb   :  { %1075 = vmatpush.bf16.msra.mxu3 %v1582_v12  ;;  %v1510_v21 = vor.u32 %v2016_v19, %v1509_v18  ;;  %v2032_v22 = vld [vmem:[#allocation2 + $0x1e4] sm:$0xf0]  ;;  %v1437_v26 = vld [vmem:[#allocation2 + $0xd0] sm:$0xf]  ;;  %v1998_v27 = vld [vmem:[#allocation2 + $0xd4] sm:$0xf0]  ;;  %v1374_v29 = vor.u32 %v1982_v24, %v1373_v23 }
   0xc   :  { %v1574_v25 = vor.u32 %v2032_v22, %v1573_v20  ;;  %v1501_v28 = vld [vmem:[#allocation2 + $0x150] sm:$0xf]  ;;  %1037 = vmatpush.bf16.msra.mxu0 %v1382_v16  ;;  %v2014_v30 = vld [vmem:[#allocation2 + $0x154] sm:$0xf0]  ;;  %v1438_v33 = vor.u32 %v1998_v27, %v1437_v26  ;;  %v1365_v35 = vld [vmem:[#allocation2 + $0x40] sm:$0xf] }
   0xd   :  { %v1565_v31 = vld [vmem:[#allocation2 + $0x1d0] sm:$0xf]  ;;  %v2030_v32 = vld [vmem:[#allocation2 + $0x1d4] sm:$0xf0]  ;;  %1050 = vmatpush.bf16.msra.mxu1 %v1446_v17  ;;  %v1502_v34 = vor.u32 %v2014_v30, %v1501_v28  ;;  %v1980_v36 = vld [vmem:[#allocation2 + $0x44] sm:$0xf0] }
   0xe   :  { %1063 = vmatpush.bf16.msra.mxu2 %v1510_v21  ;;  %v1429_v37 = vld [vmem:[#allocation2 + $0xc0] sm:$0xf]  ;;  %v1566_v38 = vor.u32 %v2030_v32, %v1565_v31  ;;  %v1996_v39 = vld [vmem:[#allocation2 + $0xc4] sm:$0xf0]  ;;  %v1366_v44 = vor.u32 %v1980_v36, %v1365_v35  ;;  %v1357_v47 = vld [vmem:[#allocation2 + $0x30] sm:$0xf] }
   0xf   :  { %1076 = vmatpush.bf16.msra.mxu3 %v1574_v25  ;;  %v1493_v40 = vld [vmem:[#allocation2 + $0x140] sm:$0xf]  ;;  %v2012_v41 = vld [vmem:[#allocation2 + $0x144] sm:$0xf0]  ;;  %v1430_v45 = vor.u32 %v1996_v39, %v1429_v37  ;;  %v1978_v48 = vld [vmem:[#allocation2 + $0x34] sm:$0xf0] }
  0x10   :  { %v1557_v42 = vld [vmem:[#allocation2 + $0x1c0] sm:$0xf]  ;;  %v2028_v43 = vld [vmem:[#allocation2 + $0x1c4] sm:$0xf0]  ;;  %1038 = vmatpush.bf16.msra.mxu0 %v1374_v29  ;;  %v1494_v46 = vor.u32 %v2012_v41, %v1493_v40  ;;  %v1421_v49 = vld [vmem:[#allocation2 + $0xb0] sm:$0xf]  ;;  %v1358_v56 = vor.u32 %v1978_v48, %v1357_v47 }
  0x11   :  { %1051 = vmatpush.bf16.msra.mxu1 %v1438_v33  ;;  %v1558_v50 = vor.u32 %v2028_v43, %v1557_v42  ;;  %v1994_v51 = vld [vmem:[#allocation2 + $0xb4] sm:$0xf0]  ;;  %v1485_v52 = vld [vmem:[#allocation2 + $0x130] sm:$0xf]  ;;  %v1349_v59 = vld [vmem:[#allocation2 + $0x20] sm:$0xf] }
  0x12   :  { %1064 = vmatpush.bf16.msra.mxu2 %v1502_v34  ;;  %v2010_v53 = vld [vmem:[#allocation2 + $0x134] sm:$0xf0]  ;;  %v1549_v54 = vld [vmem:[#allocation2 + $0x1b0] sm:$0xf]  ;;  %v1422_v57 = vor.u32 %v1994_v51, %v1421_v49  ;;  %v1976_v60 = vld [vmem:[#allocation2 + $0x24] sm:$0xf0] }
  0x13   :  { %1077 = vmatpush.bf16.msra.mxu3 %v1566_v38  ;;  %v2026_v55 = vld [vmem:[#allocation2 + $0x1b4] sm:$0xf0]  ;;  %v1486_v58 = vor.u32 %v2010_v53, %v1485_v52  ;;  %v1413_v61 = vld [vmem:[#allocation2 + $0xa0] sm:$0xf]  ;;  %v1992_v63 = vld [vmem:[#allocation2 + $0xa4] sm:$0xf0]  ;;  %v1350_v4 = vor.u32 %v1976_v60, %v1349_v59 }
  0x14   :  { %1039 = vmatpush.bf16.msra.mxu0 %v1366_v44  ;;  %v1550_v62 = vor.u32 %v2026_v55, %v1549_v54  ;;  %v1477_v0 = vld [vmem:[#allocation2 + $0x120] sm:$0xf]  ;;  %v2008_v1 = vld [vmem:[#allocation2 + $0x124] sm:$0xf0]  ;;  %v1414_v5 = vor.u32 %v1992_v63, %v1413_v61  ;;  %v1341_v7 = vld [vmem:[#allocation2 + $0x10] sm:$0xf] }
  0x15   :  { %1052 = vmatpush.bf16.msra.mxu1 %v1430_v45  ;;  %v1541_v2 = vld [vmem:[#allocation2 + $0x1a0] sm:$0xf]  ;;  %v2024_v3 = vld [vmem:[#allocation2 + $0x1a4] sm:$0xf0]  ;;  %v1478_v6 = vor.u32 %v2008_v1, %v1477_v0  ;;  %v1974_v8 = vld [vmem:[#allocation2 + $0x14] sm:$0xf0] }
  0x16   :  { %1065 = vmatpush.bf16.msra.mxu2 %v1494_v46  ;;  %v1405_v9 = vld [vmem:[#allocation2 + $0x90] sm:$0xf]  ;;  %v1542_v10 = vor.u32 %v2024_v3, %v1541_v2  ;;  %v1990_v11 = vld [vmem:[#allocation2 + $0x94] sm:$0xf0]  ;;  %v1342_v16 = vor.u32 %v1974_v8, %v1341_v7  ;;  %v1333_v17 = vld [vmem:[#allocation2] sm:$0xf] }
  0x17   :  { %1078 = vmatpush.bf16.msra.mxu3 %v1558_v50  ;;  %v1469_v12 = vld [vmem:[#allocation2 + $0x110] sm:$0xf]  ;;  %v2006_v13 = vld [vmem:[#allocation2 + $0x114] sm:$0xf0]  ;;  %v1972_v18 = vld [vmem:[#allocation2 + $0x4] sm:$0xf0]  ;;  %v1406_v19 = vor.u32 %v1990_v11, %v1405_v9 }
  0x18   :  { %1040 = vmatpush.bf16.msra.mxu0 %v1358_v56  ;;  %v1533_v14 = vld [vmem:[#allocation2 + $0x190] sm:$0xf]  ;;  %v2022_v15 = vld [vmem:[#allocation2 + $0x194] sm:$0xf0]  ;;  %v1470_v20 = vor.u32 %v2006_v13, %v1469_v12  ;;  %v1397_v21 = vld [vmem:[#allocation2 + $0x80] sm:$0xf]  ;;  %v1334_v31 = vor.u32 %v1972_v18, %v1333_v17 }
  0x19   :  { %1053 = vmatpush.bf16.msra.mxu1 %v1422_v57  ;;  %v1988_v22 = vld [vmem:[#allocation2 + $0x84] sm:$0xf0]  ;;  %v1461_v23 = vld [vmem:[#allocation2 + $0x100] sm:$0xf]  ;;  %v1534_v24 = vor.u32 %v2022_v15, %v1533_v14  ;;  %v1645_v28 = vld [vmem:[#allocation2 + $0x270] sm:$0xf] }
  0x1a   :  { %1066 = vmatpush.bf16.msra.mxu2 %v1486_v58  ;;  %v2004_v25 = vld [vmem:[#allocation2 + $0x104] sm:$0xf0]  ;;  %v1525_v26 = vld [vmem:[#allocation2 + $0x180] sm:$0xf]  ;;  %v2050_v29 = vld [vmem:[#allocation2 + $0x274] sm:$0xf0]  ;;  %v1398_v35 = vor.u32 %v1988_v22, %v1397_v21 }
  0x1b   :  { %1079 = vmatpush.bf16.msra.mxu3 %v1550_v62  ;;  %v2020_v27 = vld [vmem:[#allocation2 + $0x184] sm:$0xf0]  ;;  %v1709_v30 = vld [vmem:[#allocation2 + $0x2f0] sm:$0xf]  ;;  %v2066_v32 = vld [vmem:[#allocation2 + $0x2f4] sm:$0xf0]  ;;  %v1462_v36 = vor.u32 %v2004_v25, %v1461_v23  ;;  %v1646_v40 = vor.u32 %v2050_v29, %v1645_v28 }
  0x1c   :  { %1041 = vmatpush.bf16.msra.mxu0 %v1350_v4  ;;  %v1773_v33 = vld [vmem:[#allocation2 + $0x370] sm:$0xf]  ;;  %v2082_v34 = vld [vmem:[#allocation2 + $0x374] sm:$0xf0]  ;;  %v1526_v39 = vor.u32 %v2020_v27, %v1525_v26  ;;  %v1710_v41 = vor.u32 %v2066_v32, %v1709_v30  ;;  %v1637_v43 = vld [vmem:[#allocation2 + $0x260] sm:$0xf] }
  0x1d   :  { %1054 = vmatpush.bf16.msra.mxu1 %v1414_v5  ;;  %v1837_v37 = vld [vmem:[#allocation2 + $0x3f0] sm:$0xf]  ;;  %v2098_v38 = vld [vmem:[#allocation2 + $0x3f4] sm:$0xf0]  ;;  %v1774_v42 = vor.u32 %v2082_v34, %v1773_v33  ;;  %v2048_v44 = vld [vmem:[#allocation2 + $0x264] sm:$0xf0] }
  0x1e   :  { %1067 = vmatpush.bf16.msra.mxu2 %v1478_v6  ;;  %v1701_v45 = vld [vmem:[#allocation2 + $0x2e0] sm:$0xf]  ;;  %v1838_v46 = vor.u32 %v2098_v38, %v1837_v37  ;;  %v2064_v47 = vld [vmem:[#allocation2 + $0x2e4] sm:$0xf0]  ;;  %v1638_v52 = vor.u32 %v2048_v44, %v1637_v43  ;;  %v1629_v53 = vld [vmem:[#allocation2 + $0x250] sm:$0xf] }
  0x1f   :  { %1080 = vmatpush.bf16.msra.mxu3 %v1542_v10  ;;  %v1765_v48 = vld [vmem:[#allocation2 + $0x360] sm:$0xf]  ;;  %v2080_v49 = vld [vmem:[#allocation2 + $0x364] sm:$0xf0]  ;;  %v1702_v54 = vor.u32 %v2064_v47, %v1701_v45  ;;  %v2046_v56 = vld [vmem:[#allocation2 + $0x254] sm:$0xf0] }
  0x20   :  { %1042 = vmatpush.bf16.msra.mxu0 %v1342_v16  ;;  %v1829_v50 = vld [vmem:[#allocation2 + $0x3e0] sm:$0xf]  ;;  %v2096_v51 = vld [vmem:[#allocation2 + $0x3e4] sm:$0xf0]  ;;  %v1766_v55 = vor.u32 %v2080_v49, %v1765_v48  ;;  %v1693_v57 = vld [vmem:[#allocation2 + $0x2d0] sm:$0xf]  ;;  %v1630_v0 = vor.u32 %v2046_v56, %v1629_v53 }
  0x21   :  { %1055 = vmatpush.bf16.msra.mxu1 %v1406_v19  ;;  %v2062_v58 = vld [vmem:[#allocation2 + $0x2d4] sm:$0xf0]  ;;  %v1830_v59 = vor.u32 %v2096_v51, %v1829_v50  ;;  %v1757_v60 = vld [vmem:[#allocation2 + $0x350] sm:$0xf]  ;;  %v31_v2 = vld [vmem:[%s2256_s0 + $0x8] sm:$0xff] }
  0x22   :  { %1068 = vmatpush.bf16.msra.mxu2 %v1470_v20  ;;  %v2078_v61 = vld [vmem:[#allocation2 + $0x354] sm:$0xf0]  ;;  %v1821_v62 = vld [vmem:[#allocation2 + $0x3d0] sm:$0xf]  ;;  %v1694_v1 = vor.u32 %v2062_v58, %v1693_v57  ;;  %v30_v3 = vld [vmem:[%s2256_s0] sm:$0xff]  ;;  %v208_v8 = vunpack.c.l.b16 %v31_v2  ;;  %v209_v10 = vunpack.c.h.b16 %v31_v2 }
  0x23   :  { %1081 = vmatpush.bf16.msra.mxu3 %v1534_v24  ;;  %v2094_v63 = vld [vmem:[#allocation2 + $0x3d4] sm:$0xf0]  ;;  %v1758_v4 = vor.u32 %v2078_v61, %v1757_v60  ;;  %v1621_v5 = vld [vmem:[#allocation2 + $0x240] sm:$0xf]  ;;  %v2044_v6 = vld [vmem:[#allocation2 + $0x244] sm:$0xf0]  ;;  %v206_v9 = vunpack.c.l.b16 %v30_v3  ;;  %v207_v15 = vunpack.c.h.b16 %v30_v3 }
  0x24   :  { %1043 = vmatpush.bf16.msra.mxu0 %v1334_v31  ;;  %v1685_v7 = vld [vmem:[#allocation2 + $0x2c0] sm:$0xf]  ;;  %v1822_v11 = vor.u32 %v2094_v63, %v1821_v62  ;;  %v2060_v12 = vld [vmem:[#allocation2 + $0x2c4] sm:$0xf0]  ;;  %v2198_v18 = vpack.c.b16 %v208_v8, %v208_v8  ;;  %v2202_v20 = vpack.c.b16 %v209_v10, %v209_v10  ;;  %v1622_v21 = vor.u32 %v2044_v6, %v1621_v5  ;;  %v1613_v25 = vld [vmem:[#allocation2 + $0x230] sm:$0xf] }
  0x25   :  { %1056 = vmatpush.bf16.msra.mxu1 %v1398_v35  ;;  %v1749_v13 = vld [vmem:[#allocation2 + $0x340] sm:$0xf]  ;;  %v2076_v14 = vld [vmem:[#allocation2 + $0x344] sm:$0xf0]  ;;  %v2200_v19 = vpack.c.b16 %v206_v9, %v206_v9  ;;  %v2204_v22 = vpack.c.b16 %v207_v15, %v207_v15  ;;  %v1686_v23 = vor.u32 %v2060_v12, %v1685_v7  ;;  %v2042_v26 = vld [vmem:[#allocation2 + $0x234] sm:$0xf0] }
  0x26   :  { %1069 = vmatpush.bf16.msra.mxu2 %v1462_v36  ;;  %v1813_v16 = vld [vmem:[#allocation2 + $0x3c0] sm:$0xf]  ;;  %v2092_v17 = vld [vmem:[#allocation2 + $0x3c4] sm:$0xf0]  ;;  %v1750_v24 = vor.u32 %v2076_v14, %v1749_v13  ;;  %v1677_v27 = vld [vmem:[#allocation2 + $0x2b0] sm:$0xf]  ;;  %v1614_v34 = vor.u32 %v2042_v26, %v1613_v25 }
  0x27   :  { %1082 = vmatpush.bf16.msra.mxu3 %v1526_v39  ;;  %v1814_v28 = vor.u32 %v2092_v17, %v1813_v16  ;;  %v2058_v29 = vld [vmem:[#allocation2 + $0x2b4] sm:$0xf0]  ;;  %v1741_v30 = vld [vmem:[#allocation2 + $0x330] sm:$0xf]  ;;  %1044 = vmatmul.bf16.vlgmr.msra.gmra.mxu0 %v2200_v19  ;;  %v1605_v37 = vld [vmem:[#allocation2 + $0x220] sm:$0xf] }
  0x28   :  { %1088 = vmatpush.bf16.msrb.mxu0 %v1646_v40  ;;  %v2074_v31 = vld [vmem:[#allocation2 + $0x334] sm:$0xf0]  ;;  %v1805_v32 = vld [vmem:[#allocation2 + $0x3b0] sm:$0xf]  ;;  %1057 = vmatmul.bf16.vlgmr.msra.gmra.mxu1 %v2204_v22  ;;  %v1678_v35 = vor.u32 %v2058_v29, %v1677_v27  ;;  %v2040_v38 = vld [vmem:[#allocation2 + $0x224] sm:$0xf0] }
  0x29   :  { %1101 = vmatpush.bf16.msrb.mxu1 %v1710_v41  ;;  %1070 = vmatmul.bf16.vlgmr.msra.gmra.mxu2 %v2198_v18  ;;  %v2090_v33 = vld [vmem:[#allocation2 + $0x3b4] sm:$0xf0]  ;;  %v1742_v36 = vor.u32 %v2074_v31, %v1741_v30  ;;  %v1669_v39 = vld [vmem:[#allocation2 + $0x2a0] sm:$0xf]  ;;  %v2056_v41 = vld [vmem:[#allocation2 + $0x2a4] sm:$0xf0] }
  0x2a   :  { %1114 = vmatpush.bf16.msrb.mxu2 %v1774_v42  ;;  %1083 = vmatmul.bf16.vlgmr.msra.gmra.mxu3 %v2202_v20  ;;  %v1806_v40 = vor.u32 %v2090_v33, %v1805_v32  ;;  %v1733_v42 = vld [vmem:[#allocation2 + $0x320] sm:$0xf]  ;;  %v2072_v43 = vld [vmem:[#allocation2 + $0x324] sm:$0xf0]  ;;  %v1670_v47 = vor.u32 %v2056_v41, %v1669_v39  ;;  %v1597_v49 = vld [vmem:[#allocation2 + $0x210] sm:$0xf] }
  0x2b   :  { %1127 = vmatpush.bf16.msrb.mxu3 %v1838_v46  ;;  %v1797_v44 = vld [vmem:[#allocation2 + $0x3a0] sm:$0xf]  ;;  %v2088_v45 = vld [vmem:[#allocation2 + $0x3a4] sm:$0xf0]  ;;  %v1606_v46 = vor.u32 %v2040_v38, %v1605_v37  ;;  %v1734_v48 = vor.u32 %v2072_v43, %v1733_v42  ;;  %v2038_v50 = vld [vmem:[#allocation2 + $0x214] sm:$0xf0] }
  0x2c   :  { %1089 = vmatpush.bf16.msrb.mxu0 %v1638_v52  ;;  %v1661_v51 = vld [vmem:[#allocation2 + $0x290] sm:$0xf]  ;;  %v1798_v52 = vor.u32 %v2088_v45, %v1797_v44  ;;  %v2054_v53 = vld [vmem:[#allocation2 + $0x294] sm:$0xf0]  ;;  %v1589_v58 = vld [vmem:[#allocation2 + $0x200] sm:$0xf] }
  0x2d   :  { %1102 = vmatpush.bf16.msrb.mxu1 %v1702_v54  ;;  %v1725_v54 = vld [vmem:[#allocation2 + $0x310] sm:$0xf]  ;;  %v2086_v57 = vld [vmem:[#allocation2 + $0x394] sm:$0xf0]  ;;  %v2036_v60 = vld [vmem:[#allocation2 + $0x204] sm:$0xf0]  ;;  %v1662_v63 = vor.u32 %v2054_v53, %v1661_v51 }
  0x2e   :  { %1115 = vmatpush.bf16.msrb.mxu2 %v1766_v55  ;;  %v2070_v55 = vld [vmem:[#allocation2 + $0x314] sm:$0xf0]  ;;  %v1789_v56 = vld [vmem:[#allocation2 + $0x390] sm:$0xf]  ;;  %v1653_v61 = vld [vmem:[#allocation2 + $0x280] sm:$0xf] }
  0x2f   :  { %1128 = vmatpush.bf16.msrb.mxu3 %v1830_v59  ;;  %v1598_v59 = vor.u32 %v2038_v50, %v1597_v49  ;;  %v2052_v62 = vld [vmem:[#allocation2 + $0x284] sm:$0xf0]  ;;  %v33_v3 = vld [vmem:[%s2256_s0 + $0x18] sm:$0xff]  ;;  %v1781_v5 = vld [vmem:[#allocation2 + $0x380] sm:$0xf] }
  0x30   :  { %1090 = vmatpush.bf16.msrb.mxu0 %v1630_v0  ;;  %v1726_v0 = vor.u32 %v2070_v55, %v1725_v54  ;;  %v2068_v2 = vld [vmem:[#allocation2 + $0x304] sm:$0xf0]  ;;  %v32_v7 = vld [vmem:[%s2256_s0 + $0x10] sm:$0xff]  ;;  %v2114_v9 = vld [vmem:[#allocation2 + $0x474] sm:$0xf0]  ;;  %v212_v15 = vunpack.c.l.b16 %v33_v3  ;;  %v1654_v16 = vor.u32 %v2052_v62, %v1653_v61  ;;  %v213_v25 = vunpack.c.h.b16 %v33_v3 }
  0x31   :  { %1103 = vmatpush.bf16.msrb.mxu1 %v1694_v1  ;;  %v1717_v1 = vld [vmem:[#allocation2 + $0x300] sm:$0xf]  ;;  %v2084_v6 = vld [vmem:[#allocation2 + $0x384] sm:$0xf0]  ;;  %v1901_v8 = vld [vmem:[#allocation2 + $0x470] sm:$0xf] }
  0x32   :  { %1116 = vmatpush.bf16.msrb.mxu2 %v1758_v4  ;;  %v1790_v4 = vor.u32 %v2086_v57, %v1789_v56  ;;  %v1965_v10 = vld [vmem:[#allocation2 + $0x4f0] sm:$0xf]  ;;  %v2130_v12 = vld [vmem:[#allocation2 + $0x4f4] sm:$0xf0]  ;;  %v1985_v13 = vld [vmem:[#allocation2 + $0x74] sm:$0xf]  ;;  %v1718_v17 = vor.u32 %v2068_v2, %v1717_v1  ;;  %v1782_v26 = vor.u32 %v2084_v6, %v1781_v5  ;;  %v1902_v27 = vor.u32 %v2114_v9, %v1901_v8 }
  0x33   :  { %1129 = vmatpush.bf16.msrb.mxu3 %v1822_v11  ;;  %v1590_v11 = vor.u32 %v2036_v60, %v1589_v58  ;;  %v1391_v14 = vld [vmem:[#allocation2 + $0x78] sm:$0xf0]  ;;  %v1966_v29 = vor.u32 %v2130_v12, %v1965_v10  ;;  %v1893_v31 = vld [vmem:[#allocation2 + $0x460] sm:$0xf]  ;;  %v2112_v32 = vld [vmem:[#allocation2 + $0x464] sm:$0xf0]  ;;  %v2216_v38 = vpack.c.b16 %v212_v15, %v212_v15  ;;  %v2220_v42 = vpack.c.b16 %v213_v25, %v213_v25 }
  0x34   :  { %1091 = vmatpush.bf16.msrb.mxu0 %v1622_v21  ;;  %v2001_v21 = vld [vmem:[#allocation2 + $0xf4] sm:$0xf]  ;;  %v1394_v30 = vor.u32 %v1985_v13, %v1391_v14  ;;  %v1957_v33 = vld [vmem:[#allocation2 + $0x4e0] sm:$0xf]  ;;  %v1383_v37 = vld [vmem:[#allocation2 + $0x68] sm:$0xf0]  ;;  %v1894_v43 = vor.u32 %v2112_v32, %v1893_v31 }
  0x35   :  { %1104 = vmatpush.bf16.msrb.mxu1 %v1686_v23  ;;  %v1455_v23 = vld [vmem:[#allocation2 + $0xf8] sm:$0xf0]  ;;  %v1999_v39 = vld [vmem:[#allocation2 + $0xe4] sm:$0xf]  ;;  %v1949_v49 = vld [vmem:[#allocation2 + $0x4d0] sm:$0xf] }
  0x36   :  { %1117 = vmatpush.bf16.msrb.mxu2 %v1750_v24  ;;  %v210_v24 = vunpack.c.l.b16 %v32_v7  ;;  %v2126_v51 = vld [vmem:[#allocation2 + $0x4d4] sm:$0xf0]  ;;  %v1375_v53 = vld [vmem:[#allocation2 + $0x58] sm:$0xf0]  ;;  %v1997_v54 = vld [vmem:[#allocation2 + $0xd4] sm:$0xf] }
  0x37   :  { %1130 = vmatpush.bf16.msrb.mxu3 %v1814_v28  ;;  %v211_v28 = vunpack.c.h.b16 %v32_v7  ;;  %v1439_v55 = vld [vmem:[#allocation2 + $0xd8] sm:$0xf0]  ;;  %v1950_v57 = vor.u32 %v2126_v51, %v1949_v49  ;;  %v2108_v60 = vld [vmem:[#allocation2 + $0x444] sm:$0xf0]  ;;  %v1941_v61 = vld [vmem:[#allocation2 + $0x4c0] sm:$0xf] }
  0x38   :  { %1092 = vmatpush.bf16.msrb.mxu0 %v1614_v34  ;;  %v1458_v34 = vor.u32 %v2001_v21, %v1455_v23  ;;  %v2218_v41 = vpack.c.b16 %v210_v24, %v210_v24  ;;  %v1442_v62 = vor.u32 %v1997_v54, %v1439_v55  ;;  %v1367_v1 = vld [vmem:[#allocation2 + $0x48] sm:$0xf0]  ;;  %v1995_v2 = vld [vmem:[#allocation2 + $0xc4] sm:$0xf]  ;;  %v1869_v7 = vld [vmem:[#allocation2 + $0x430] sm:$0xf] }
  0x39   :  { %1105 = vmatpush.bf16.msrb.mxu1 %v1678_v35  ;;  %v2128_v35 = vld [vmem:[#allocation2 + $0x4e4] sm:$0xf0]  ;;  %v2222_v44 = vpack.c.b16 %v211_v28, %v211_v28  ;;  %v1431_v3 = vld [vmem:[#allocation2 + $0xc8] sm:$0xf0]  ;;  %v2106_v8 = vld [vmem:[#allocation2 + $0x434] sm:$0xf0] }
  0x3a   :  { %1118 = vmatpush.bf16.msrb.mxu2 %v1742_v36  ;;  %v1983_v36 = vld [vmem:[#allocation2 + $0x64] sm:$0xf]  ;;  %v1958_v45 = vor.u32 %v2128_v35, %v1957_v33  ;;  %v1933_v9 = vld [vmem:[#allocation2 + $0x4b0] sm:$0xf]  ;;  %v1434_v10 = vor.u32 %v1995_v2, %v1431_v3  ;;  %v1977_v12 = vld [vmem:[#allocation2 + $0x34] sm:$0xf] }
  0x3b   :  { %1131 = vmatpush.bf16.msrb.mxu3 %v1806_v40  ;;  %v1447_v40 = vld [vmem:[#allocation2 + $0xe8] sm:$0xf0]  ;;  %v1359_v13 = vld [vmem:[#allocation2 + $0x38] sm:$0xf0]  ;;  %v1993_v14 = vld [vmem:[#allocation2 + $0xb4] sm:$0xf] }
  0x3c   :  { %1093 = vmatpush.bf16.msrb.mxu0 %v1606_v46  ;;  %v1386_v46 = vor.u32 %v1983_v36, %v1383_v37  ;;  %v1450_v50 = vor.u32 %v1999_v39, %v1447_v40  ;;  %v1423_v15 = vld [vmem:[#allocation2 + $0xb8] sm:$0xf0]  ;;  %v1362_v21 = vor.u32 %v1977_v12, %v1359_v13  ;;  %v1861_v23 = vld [vmem:[#allocation2 + $0x420] sm:$0xf]  ;;  %v2104_v24 = vld [vmem:[#allocation2 + $0x424] sm:$0xf0] }
  0x3d   :  { %1106 = vmatpush.bf16.msrb.mxu1 %v1670_v47  ;;  %v1885_v47 = vld [vmem:[#allocation2 + $0x450] sm:$0xf]  ;;  %v1925_v25 = vld [vmem:[#allocation2 + $0x4a0] sm:$0xf]  ;;  %v1975_v28 = vld [vmem:[#allocation2 + $0x24] sm:$0xf]  ;;  %v1862_v32 = vor.u32 %v2104_v24, %v1861_v23 }
  0x3e   :  { %1119 = vmatpush.bf16.msrb.mxu2 %v1734_v48  ;;  %v2110_v48 = vld [vmem:[#allocation2 + $0x454] sm:$0xf0]  ;;  %v1415_v31 = vld [vmem:[#allocation2 + $0xa8] sm:$0xf0]  ;;  %v1853_v35 = vld [vmem:[#allocation2 + $0x410] sm:$0xf] }
  0x3f   :  { %1132 = vmatpush.bf16.msrb.mxu3 %v1798_v52  ;;  %v1981_v52 = vld [vmem:[#allocation2 + $0x54] sm:$0xf]  ;;  %v1886_v56 = vor.u32 %v2110_v48, %v1885_v47  ;;  %v2102_v36 = vld [vmem:[#allocation2 + $0x414] sm:$0xf0]  ;;  %v1917_v37 = vld [vmem:[#allocation2 + $0x490] sm:$0xf] }
  0x40   :  { %1094 = vmatpush.bf16.msrb.mxu0 %v1598_v59  ;;  %v1378_v58 = vor.u32 %v1981_v52, %v1375_v53  ;;  %v1877_v59 = vld [vmem:[#allocation2 + $0x440] sm:$0xf]  ;;  %v2118_v40 = vld [vmem:[#allocation2 + $0x494] sm:$0xf0]  ;;  %v1407_v47 = vld [vmem:[#allocation2 + $0x98] sm:$0xf0]  ;;  %v1854_v48 = vor.u32 %v2102_v36, %v1853_v35 }
  0x41   :  { %1107 = vmatpush.bf16.msrb.mxu1 %v1662_v63  ;;  %v2124_v63 = vld [vmem:[#allocation2 + $0x4c4] sm:$0xf0]  ;;  %v1845_v49 = vld [vmem:[#allocation2 + $0x400] sm:$0xf]  ;;  %v1918_v52 = vor.u32 %v2118_v40, %v1917_v37  ;;  %v1971_v55 = vld [vmem:[#allocation2 + $0x4] sm:$0xf] }
  0x42   :  { %1120 = vmatpush.bf16.msrb.mxu2 %v1726_v0  ;;  %v1979_v0 = vld [vmem:[#allocation2 + $0x44] sm:$0xf]  ;;  %v1942_v5 = vor.u32 %v2124_v63, %v1941_v61  ;;  %v1909_v51 = vld [vmem:[#allocation2 + $0x480] sm:$0xf]  ;;  %v2116_v54 = vld [vmem:[#allocation2 + $0x484] sm:$0xf0] }
  0x43   :  { %1133 = vmatpush.bf16.msrb.mxu3 %v1790_v4  ;;  %v1878_v4 = vor.u32 %v2108_v60, %v1877_v59  ;;  %v1370_v6 = vor.u32 %v1979_v0, %v1367_v1  ;;  %v1987_v59 = vld [vmem:[#allocation2 + $0x84] sm:$0xf]  ;;  %v1399_v60 = vld [vmem:[#allocation2 + $0x88] sm:$0xf0]  ;;  %v2017_v61 = vld [vmem:[#allocation2 + $0x174] sm:$0xf] }
  0x44   :  { %1095 = vmatpush.bf16.msrb.mxu0 %v1590_v11  ;;  %v2122_v11 = vld [vmem:[#allocation2 + $0x4b4] sm:$0xf0]  ;;  %v2033_v63 = vld [vmem:[#allocation2 + $0x1f4] sm:$0xf]  ;;  %v1583_v1 = vld [vmem:[#allocation2 + $0x1f8] sm:$0xf0] }
  0x45   :  { %1108 = vmatpush.bf16.msrb.mxu1 %v1654_v16  ;;  %v1870_v16 = vor.u32 %v2106_v8, %v1869_v7  ;;  %v2049_v2 = vld [vmem:[#allocation2 + $0x274] sm:$0xf]  ;;  %v1647_v3 = vld [vmem:[#allocation2 + $0x278] sm:$0xf0]  ;;  %v1586_v12 = vor.u32 %v2033_v63, %v1583_v1  ;;  %v1575_v23 = vld [vmem:[#allocation2 + $0x1e8] sm:$0xf0] }
  0x46   :  { %1121 = vmatpush.bf16.msrb.mxu2 %v1718_v17  ;;  %v1934_v17 = vor.u32 %v2122_v11, %v1933_v9  ;;  %v2065_v7 = vld [vmem:[#allocation2 + $0x2f4] sm:$0xf]  ;;  %v1711_v8 = vld [vmem:[#allocation2 + $0x2f8] sm:$0xf0]  ;;  %v1650_v13 = vor.u32 %v2049_v2, %v1647_v3  ;;  %v2047_v24 = vld [vmem:[#allocation2 + $0x264] sm:$0xf] }
  0x47   :  { %1134 = vmatpush.bf16.msrb.mxu3 %v1782_v26  ;;  %1096 = vmatmul.bf16.vlgmr.msrb.gmra.mxu0 %v2218_v41  ;;  %v1426_v26 = vor.u32 %v1993_v14, %v1423_v15  ;;  %v2015_v14 = vld [vmem:[#allocation2 + $0x164] sm:$0xf]  ;;  %v1511_v15 = vld [vmem:[#allocation2 + $0x168] sm:$0xf0]  ;;  %v1567_v36 = vld [vmem:[#allocation2 + $0x1d8] sm:$0xf0] }
  0x48   :  { %1140 = vmatpush.bf16.msra.mxu0 %v1902_v27  ;;  %1109 = vmatmul.bf16.vlgmr.msrb.gmra.mxu1 %v2222_v44  ;;  %v2120_v27 = vld [vmem:[#allocation2 + $0x4a4] sm:$0xf0]  ;;  %v2045_v37 = vld [vmem:[#allocation2 + $0x254] sm:$0xf]  ;;  %v1679_v2 = vld [vmem:[#allocation2 + $0x2b8] sm:$0xf0] }
  0x49   :  { %1153 = vmatpush.bf16.msra.mxu1 %v1966_v29  ;;  %1122 = vmatmul.bf16.vlgmr.msrb.gmra.mxu2 %v2216_v38  ;;  %v1351_v29 = vld [vmem:[#allocation2 + $0x28] sm:$0xf0]  ;;  %v1926_v33 = vor.u32 %v2120_v27, %v1925_v25  ;;  %v2063_v27 = vld [vmem:[#allocation2 + $0x2e4] sm:$0xf]  ;;  %v2061_v40 = vld [vmem:[#allocation2 + $0x2d4] sm:$0xf] }
  0x4a   :  { %1166 = vmatpush.bf16.msra.mxu2 %v1394_v30  ;;  %1135 = vmatmul.bf16.vlgmr.msrb.gmra.mxu3 %v2220_v42  ;;  %v1991_v30 = vld [vmem:[#allocation2 + $0xa4] sm:$0xf]  ;;  %v1639_v25 = vld [vmem:[#allocation2 + $0x268] sm:$0xf0]  ;;  %v2041_v63 = vld [vmem:[#allocation2 + $0x234] sm:$0xf] }
  0x4b   :  { %1179 = vmatpush.bf16.msra.mxu3 %v1458_v34  ;;  %v1354_v34 = vor.u32 %v1975_v28, %v1351_v29  ;;  %v1418_v39 = vor.u32 %v1991_v30, %v1415_v31  ;;  %v1703_v28 = vld [vmem:[#allocation2 + $0x2e8] sm:$0xf0]  ;;  %v1514_v29 = vor.u32 %v2015_v14, %v1511_v15  ;;  %v1642_v31 = vor.u32 %v2047_v24, %v1639_v25  ;;  %v2057_v1 = vld [vmem:[#allocation2 + $0x2b4] sm:$0xf]  ;;  %v1471_v24 = vld [vmem:[#allocation2 + $0x118] sm:$0xf0] }
  0x4c   :  { %1141 = vmatpush.bf16.msra.mxu0 %v1894_v43  ;;  %v1973_v43 = vld [vmem:[#allocation2 + $0x14] sm:$0xf]  ;;  %v1706_v35 = vor.u32 %v2063_v27, %v1703_v28  ;;  %v1671_v14 = vld [vmem:[#allocation2 + $0x2a8] sm:$0xf0]  ;;  %v1535_v28 = vld [vmem:[#allocation2 + $0x198] sm:$0xf0] }
  0x4d   :  { %1154 = vmatpush.bf16.msra.mxu1 %v1958_v45  ;;  %v1343_v45 = vld [vmem:[#allocation2 + $0x18] sm:$0xf0]  ;;  %v2021_v25 = vld [vmem:[#allocation2 + $0x194] sm:$0xf] }
  0x4e   :  { %1167 = vmatpush.bf16.msra.mxu2 %v1386_v46  ;;  %v1989_v46 = vld [vmem:[#allocation2 + $0x94] sm:$0xf]  ;;  %v1346_v53 = vor.u32 %v1973_v43, %v1343_v45  ;;  %v1695_v43 = vld [vmem:[#allocation2 + $0x2d8] sm:$0xf0] }
  0x4f   :  { %1180 = vmatpush.bf16.msra.mxu3 %v1450_v50  ;;  %v2100_v50 = vld [vmem:[#allocation2 + $0x404] sm:$0xf0] }
  0x50   :  { %1142 = vmatpush.bf16.msra.mxu0 %v1886_v56  ;;  %v34_v56 = vld [vmem:[%s2256_s0 + $0x20] sm:$0xff]  ;;  %v1846_v0 = vor.u32 %v2100_v50, %v1845_v49  ;;  %v1495_v49 = vld [vmem:[#allocation2 + $0x148] sm:$0xf0] }
  0x51   :  { %1155 = vmatpush.bf16.msra.mxu1 %v1950_v57  ;;  %v1410_v57 = vor.u32 %v1989_v46, %v1407_v47  ;;  %v215_v9 = vunpack.c.h.b16 %v34_v56  ;;  %v2027_v50 = vld [vmem:[#allocation2 + $0x1c4] sm:$0xf] }
  0x52   :  { %1168 = vmatpush.bf16.msra.mxu2 %v1378_v58  ;;  %v1335_v58 = vld [vmem:[#allocation2 + $0x8] sm:$0xf0] }
  0x53   :  { %1181 = vmatpush.bf16.msra.mxu3 %v1442_v62  ;;  %v1519_v62 = vld [vmem:[#allocation2 + $0x178] sm:$0xf0] }
  0x54   :  { %1143 = vmatpush.bf16.msra.mxu0 %v1878_v4  ;;  %v214_v4 = vunpack.c.l.b16 %v34_v56  ;;  %v1522_v11 = vor.u32 %v2017_v61, %v1519_v62  ;;  %v1687_v56 = vld [vmem:[#allocation2 + $0x2c8] sm:$0xf0]  ;;  %v1551_v62 = vld [vmem:[#allocation2 + $0x1b8] sm:$0xf0] }
  0x55   :  { %1156 = vmatpush.bf16.msra.mxu1 %v1942_v5  ;;  %v1910_v5 = vor.u32 %v2116_v54, %v1909_v51  ;;  %v1698_v51 = vor.u32 %v2061_v40, %v1695_v43  ;;  %v1623_v54 = vld [vmem:[#allocation2 + $0x248] sm:$0xf0]  ;;  %v2035_v43 = vld [vmem:[#allocation2 + $0x204] sm:$0xf] }
  0x56   :  { %1169 = vmatpush.bf16.msra.mxu2 %v1370_v6  ;;  %v1338_v6 = vor.u32 %v1971_v55, %v1335_v58  ;;  %v2059_v55 = vld [vmem:[#allocation2 + $0x2c4] sm:$0xf]  ;;  %v2009_v58 = vld [vmem:[#allocation2 + $0x134] sm:$0xf]  ;;  %v1527_v40 = vld [vmem:[#allocation2 + $0x188] sm:$0xf0] }
  0x57   :  { %1182 = vmatpush.bf16.msra.mxu3 %v1434_v10  ;;  %v1402_v10 = vor.u32 %v1987_v59, %v1399_v60  ;;  %v1487_v59 = vld [vmem:[#allocation2 + $0x138] sm:$0xf0]  ;;  %v2025_v60 = vld [vmem:[#allocation2 + $0x1b4] sm:$0xf]  ;;  %v1690_v61 = vor.u32 %v2059_v55, %v1687_v56 }
  0x58   :  { %1144 = vmatpush.bf16.msra.mxu0 %v1870_v16  ;;  %v2031_v16 = vld [vmem:[#allocation2 + $0x1e4] sm:$0xf]  ;;  %v1490_v3 = vor.u32 %v2009_v58, %v1487_v59  ;;  %v1903_v55 = vld [vmem:[#allocation2 + $0x478] sm:$0xf0] }
  0x59   :  { %1157 = vmatpush.bf16.msra.mxu1 %v1934_v17  ;;  %v1714_v17 = vor.u32 %v2065_v7, %v1711_v8  ;;  %v1578_v30 = vor.u32 %v2031_v16, %v1575_v23  ;;  %v1479_v7 = vld [vmem:[#allocation2 + $0x128] sm:$0xf0]  ;;  %v2023_v8 = vld [vmem:[#allocation2 + $0x1a4] sm:$0xf]  ;;  %v2005_v23 = vld [vmem:[#allocation2 + $0x114] sm:$0xf] }
  0x5a   :  { %1170 = vmatpush.bf16.msra.mxu2 %v1362_v21  ;;  %v2231_v21 = vpack.c.b16 %v214_v4, %v214_v4  ;;  %v1554_v4 = vor.u32 %v2025_v60, %v1551_v62  ;;  %v2079_v62 = vld [vmem:[#allocation2 + $0x364] sm:$0xf] }
  0x5b   :  { %1183 = vmatpush.bf16.msra.mxu3 %v1426_v26  ;;  %v2233_v26 = vpack.c.b16 %v215_v9, %v215_v9  ;;  %v1682_v9 = vor.u32 %v2057_v1, %v1679_v2  ;;  %v1831_v2 = vld [vmem:[#allocation2 + $0x3e8] sm:$0xf0] }
  0x5c   :  { %1145 = vmatpush.bf16.msra.mxu0 %v1862_v32  ;;  %v2013_v32 = vld [vmem:[#allocation2 + $0x154] sm:$0xf] }
  0x5d   :  { %1158 = vmatpush.bf16.msra.mxu1 %v1926_v33  ;;  %v1503_v33 = vld [vmem:[#allocation2 + $0x158] sm:$0xf0] }
  0x5e   :  { %1171 = vmatpush.bf16.msra.mxu2 %v1354_v34  ;;  %v2029_v34 = vld [vmem:[#allocation2 + $0x1d4] sm:$0xf]  ;;  %v1506_v45 = vor.u32 %v2013_v32, %v1503_v33  ;;  %v1663_v32 = vld [vmem:[#allocation2 + $0x298] sm:$0xf0]  ;;  %v1474_v33 = vor.u32 %v2005_v23, %v1471_v24 }
  0x5f   :  { %1184 = vmatpush.bf16.msra.mxu3 %v1418_v39  ;;  %v1631_v39 = vld [vmem:[#allocation2 + $0x258] sm:$0xf0]  ;;  %v1570_v46 = vor.u32 %v2029_v34, %v1567_v36  ;;  %v2003_v34 = vld [vmem:[#allocation2 + $0x104] sm:$0xf]  ;;  %v1538_v36 = vor.u32 %v2021_v25, %v1535_v28 }
  0x60   :  { %1146 = vmatpush.bf16.msra.mxu0 %v1854_v48  ;;  %v1634_v47 = vor.u32 %v2045_v37, %v1631_v39  ;;  %v2011_v48 = vld [vmem:[#allocation2 + $0x144] sm:$0xf]  ;;  %v1951_v23 = vld [vmem:[#allocation2 + $0x4d8] sm:$0xf0] }
  0x61   :  { %1159 = vmatpush.bf16.msra.mxu1 %v1918_v52  ;;  %v1559_v52 = vld [vmem:[#allocation2 + $0x1c8] sm:$0xf0]  ;;  %v2019_v39 = vld [vmem:[#allocation2 + $0x184] sm:$0xf] }
  0x62   :  { %1172 = vmatpush.bf16.msra.mxu2 %v1346_v53  ;;  %v2043_v53 = vld [vmem:[#allocation2 + $0x244] sm:$0xf]  ;;  %v1530_v56 = vor.u32 %v2019_v39, %v1527_v40  ;;  %v2089_v39 = vld [vmem:[#allocation2 + $0x3b4] sm:$0xf] }
  0x63   :  { %1185 = vmatpush.bf16.msra.mxu3 %v1410_v57  ;;  %v1562_v57 = vor.u32 %v2027_v50, %v1559_v52  ;;  %v1775_v50 = vld [vmem:[#allocation2 + $0x378] sm:$0xf0]  ;;  %v2075_v28 = vld [vmem:[#allocation2 + $0x344] sm:$0xf] }
  0x64   :  { %1147 = vmatpush.bf16.msra.mxu0 %v1846_v0  ;;  %v1615_v0 = vld [vmem:[#allocation2 + $0x238] sm:$0xf0] }
  0x65   :  { %1160 = vmatpush.bf16.msra.mxu1 %v1910_v5  ;;  %v1618_v5 = vor.u32 %v2041_v63, %v1615_v0  ;;  %v1767_v63 = vld [vmem:[#allocation2 + $0x368] sm:$0xf0]  ;;  %v2095_v0 = vld [vmem:[#allocation2 + $0x3e4] sm:$0xf] }
  0x66   :  { %1173 = vmatpush.bf16.msra.mxu2 %v1338_v6  ;;  %v2007_v6 = vld [vmem:[#allocation2 + $0x124] sm:$0xf] }
  0x67   :  { %1186 = vmatpush.bf16.msra.mxu3 %v1402_v10  ;;  %1148 = vmatmul.bf16.vlgmr.msra.gmra.mxu0 %v2231_v21  ;;  %v1543_v10 = vld [vmem:[#allocation2 + $0x1a8] sm:$0xf0]  ;;  %v1482_v15 = vor.u32 %v2007_v6, %v1479_v7  ;;  %v1770_v7 = vor.u32 %v2079_v62, %v1767_v63  ;;  %v2069_v62 = vld [vmem:[#allocation2 + $0x314] sm:$0xf]  ;;  %v1727_v63 = vld [vmem:[#allocation2 + $0x318] sm:$0xf0] }
  0x68   :  { %1192 = vmatpush.bf16.msrb.mxu0 %v1522_v11  ;;  %1161 = vmatmul.bf16.vlgmr.msra.gmra.mxu1 %v2233_v26  ;;  %v2039_v11 = vld [vmem:[#allocation2 + $0x224] sm:$0xf]  ;;  %v1546_v16 = vor.u32 %v2023_v8, %v1543_v10  ;;  %v1959_v6 = vld [vmem:[#allocation2 + $0x4e8] sm:$0xf0]  ;;  %v1834_v8 = vor.u32 %v2095_v0, %v1831_v2  ;;  %v2077_v10 = vld [vmem:[#allocation2 + $0x354] sm:$0xf] }
  0x69   :  { %1205 = vmatpush.bf16.msrb.mxu1 %v1586_v12  ;;  %1174 = vmatmul.bf16.vlgmr.msra.gmra.mxu2 %v2200_v19  ;;  %v1498_v19 = vor.u32 %v2011_v48, %v1495_v49  ;;  %v1607_v12 = vld [vmem:[#allocation2 + $0x228] sm:$0xf0]  ;;  %v2081_v49 = vld [vmem:[#allocation2 + $0x374] sm:$0xf]  ;;  %v1791_v2 = vld [vmem:[#allocation2 + $0x398] sm:$0xf0] }
  0x6a   :  { %1218 = vmatpush.bf16.msrb.mxu2 %v1650_v13  ;;  %1187 = vmatmul.bf16.vlgmr.msra.gmra.mxu3 %v2204_v22  ;;  %v1626_v22 = vor.u32 %v2043_v53, %v1623_v54  ;;  %v2055_v13 = vld [vmem:[#allocation2 + $0x2a4] sm:$0xf]  ;;  %v1655_v48 = vld [vmem:[#allocation2 + $0x288] sm:$0xf0]  ;;  %v1839_v53 = vld [vmem:[#allocation2 + $0x3f8] sm:$0xf0]  ;;  %v1778_v59 = vor.u32 %v2081_v49, %v1775_v50 }
  0x6b   :  { %1231 = vmatpush.bf16.msrb.mxu3 %v1714_v17  ;;  %v1610_v17 = vor.u32 %v2039_v11, %v1607_v12  ;;  %v1674_v27 = vor.u32 %v2055_v13, %v1671_v14  ;;  %v2113_v54 = vld [vmem:[#allocation2 + $0x474] sm:$0xf]  ;;  %v1759_v11 = vld [vmem:[#allocation2 + $0x358] sm:$0xf0] }
  0x6c   :  { %1193 = vmatpush.bf16.msrb.mxu0 %v1514_v29  ;;  %v2037_v29 = vld [vmem:[#allocation2 + $0x214] sm:$0xf]  ;;  %v1823_v14 = vld [vmem:[#allocation2 + $0x3d8] sm:$0xf0]  ;;  %v1762_v24 = vor.u32 %v2077_v10, %v1759_v11  ;;  %v2067_v10 = vld [vmem:[#allocation2 + $0x304] sm:$0xf] }
  0x6d   :  { %1206 = vmatpush.bf16.msrb.mxu1 %v1578_v30  ;;  %v1599_v30 = vld [vmem:[#allocation2 + $0x218] sm:$0xf0]  ;;  %v2093_v12 = vld [vmem:[#allocation2 + $0x3d4] sm:$0xf]  ;;  %v1719_v11 = vld [vmem:[#allocation2 + $0x308] sm:$0xf0] }
  0x6e   :  { %1219 = vmatpush.bf16.msrb.mxu2 %v1642_v31  ;;  %v2053_v31 = vld [vmem:[#allocation2 + $0x294] sm:$0xf]  ;;  %v1602_v37 = vor.u32 %v2037_v29, %v1599_v30  ;;  %v1826_v25 = vor.u32 %v2093_v12, %v1823_v14  ;;  %v1751_v29 = vld [vmem:[#allocation2 + $0x348] sm:$0xf0]  ;;  %v2083_v12 = vld [vmem:[#allocation2 + $0x384] sm:$0xf] }
  0x6f   :  { %1232 = vmatpush.bf16.msrb.mxu3 %v1706_v35  ;;  %v1463_v35 = vld [vmem:[#allocation2 + $0x108] sm:$0xf0]  ;;  %v2085_v0 = vld [vmem:[#allocation2 + $0x394] sm:$0xf] }
  0x70   :  { %1194 = vmatpush.bf16.msrb.mxu0 %v1506_v45  ;;  %v1666_v45 = vor.u32 %v2053_v31, %v1663_v32  ;;  %v1466_v52 = vor.u32 %v2003_v34, %v1463_v35  ;;  %v1815_v31 = vld [vmem:[#allocation2 + $0x3c8] sm:$0xf0]  ;;  %v2107_v32 = vld [vmem:[#allocation2 + $0x444] sm:$0xf] }
  0x71   :  { %1207 = vmatpush.bf16.msrb.mxu1 %v1570_v46  ;;  %v1591_v46 = vld [vmem:[#allocation2 + $0x208] sm:$0xf0]  ;;  %v2123_v34 = vld [vmem:[#allocation2 + $0x4c4] sm:$0xf] }
  0x72   :  { %1220 = vmatpush.bf16.msrb.mxu2 %v1634_v47  ;;  %v2051_v47 = vld [vmem:[#allocation2 + $0x284] sm:$0xf]  ;;  %v1783_v14 = vld [vmem:[#allocation2 + $0x388] sm:$0xf0] }
  0x73   :  { %1233 = vmatpush.bf16.msrb.mxu3 %v1698_v51  ;;  %v2097_v51 = vld [vmem:[#allocation2 + $0x3f4] sm:$0xf]  ;;  %v1658_v58 = vor.u32 %v2051_v47, %v1655_v48  ;;  %v1935_v48 = vld [vmem:[#allocation2 + $0x4b8] sm:$0xf0] }
  0x74   :  { %1195 = vmatpush.bf16.msrb.mxu0 %v1498_v19  ;;  %v1594_v19 = vor.u32 %v2035_v43, %v1591_v46  ;;  %v1842_v60 = vor.u32 %v2097_v51, %v1839_v53  ;;  %v1807_v43 = vld [vmem:[#allocation2 + $0x3b8] sm:$0xf0]  ;;  %v2121_v47 = vld [vmem:[#allocation2 + $0x4b4] sm:$0xf]  ;;  %v1735_v53 = vld [vmem:[#allocation2 + $0x328] sm:$0xf0] }
  0x75   :  { %1208 = vmatpush.bf16.msrb.mxu1 %v1562_v57  ;;  %v2129_v57 = vld [vmem:[#allocation2 + $0x4f4] sm:$0xf]  ;;  %v1871_v46 = vld [vmem:[#allocation2 + $0x438] sm:$0xf0]  ;;  %v1810_v50 = vor.u32 %v2089_v39, %v1807_v43 }
  0x76   :  { %1221 = vmatpush.bf16.msrb.mxu2 %v1626_v22  ;;  %v1967_v22 = vld [vmem:[#allocation2 + $0x4f8] sm:$0xf0] }
  0x77   :  { %1234 = vmatpush.bf16.msrb.mxu3 %v1690_v61  ;;  %v1906_v61 = vor.u32 %v2113_v54, %v1903_v55  ;;  %v1970_v1 = vor.u32 %v2129_v57, %v1967_v22  ;;  %v2087_v54 = vld [vmem:[#allocation2 + $0x3a4] sm:$0xf]  ;;  %v1938_v55 = vor.u32 %v2121_v47, %v1935_v48  ;;  %v1863_v57 = vld [vmem:[#allocation2 + $0x428] sm:$0xf0] }
  0x78   :  { %1196 = vmatpush.bf16.msrb.mxu0 %v1490_v3  ;;  %v2111_v3 = vld [vmem:[#allocation2 + $0x464] sm:$0xf] }
  0x79   :  { %1209 = vmatpush.bf16.msrb.mxu1 %v1554_v4  ;;  %v1895_v4 = vld [vmem:[#allocation2 + $0x468] sm:$0xf0]  ;;  %v2119_v22 = vld [vmem:[#allocation2 + $0x4a4] sm:$0xf] }
  0x7a   :  { %1222 = vmatpush.bf16.msrb.mxu2 %v1618_v5  ;;  %v2127_v5 = vld [vmem:[#allocation2 + $0x4e4] sm:$0xf] }
  0x7b   :  { %1235 = vmatpush.bf16.msrb.mxu3 %v1682_v9  ;;  %v1898_v9 = vor.u32 %v2111_v3, %v1895_v4  ;;  %v1962_v13 = vor.u32 %v2127_v5, %v1959_v6  ;;  %v2101_v3 = vld [vmem:[#allocation2 + $0x414] sm:$0xf]  ;;  %v1855_v4 = vld [vmem:[#allocation2 + $0x418] sm:$0xf0] }
  0x7c   :  { %1197 = vmatpush.bf16.msrb.mxu0 %v1482_v15  ;;  %v2109_v15 = vld [vmem:[#allocation2 + $0x454] sm:$0xf]  ;;  %v1919_v6 = vld [vmem:[#allocation2 + $0x498] sm:$0xf0] }
  0x7d   :  { %1210 = vmatpush.bf16.msrb.mxu1 %v1546_v16  ;;  %v1887_v16 = vld [vmem:[#allocation2 + $0x458] sm:$0xf0]  ;;  %v2117_v5 = vld [vmem:[#allocation2 + $0x494] sm:$0xf] }
  0x7e   :  { %1223 = vmatpush.bf16.msrb.mxu2 %v1610_v17  ;;  %v2125_v17 = vld [vmem:[#allocation2 + $0x4d4] sm:$0xf] }
  0x7f   :  { %1236 = vmatpush.bf16.msrb.mxu3 %v1674_v27  ;;  %v1890_v27 = vor.u32 %v2109_v15, %v1887_v16  ;;  %v1954_v30 = vor.u32 %v2125_v17, %v1951_v23  ;;  %v2099_v15 = vld [vmem:[#allocation2 + $0x404] sm:$0xf]  ;;  %v1847_v16 = vld [vmem:[#allocation2 + $0x408] sm:$0xf0] }
  0x80   :  { %1198 = vmatpush.bf16.msrb.mxu0 %v1474_v33  ;;  %v1879_v33 = vld [vmem:[#allocation2 + $0x448] sm:$0xf0]  ;;  %v2115_v17 = vld [vmem:[#allocation2 + $0x484] sm:$0xf] }
  0x81   :  { %1211 = vmatpush.bf16.msrb.mxu1 %v1538_v36  ;;  %v2073_v36 = vld [vmem:[#allocation2 + $0x334] sm:$0xf]  ;;  %v1911_v23 = vld [vmem:[#allocation2 + $0x488] sm:$0xf0] }
  0x82   :  { %1224 = vmatpush.bf16.msrb.mxu2 %v1602_v37  ;;  %v1743_v37 = vld [vmem:[#allocation2 + $0x338] sm:$0xf0] }
  0x83   :  { %1237 = vmatpush.bf16.msrb.mxu3 %v1666_v45  ;;  %v2105_v45 = vld [vmem:[#allocation2 + $0x434] sm:$0xf]  ;;  %v1746_v49 = vor.u32 %v2073_v36, %v1743_v37 }
  0x84   :  { %1199 = vmatpush.bf16.msrb.mxu0 %v1466_v52  ;;  %v1874_v51 = vor.u32 %v2105_v45, %v1871_v46  ;;  %v2071_v52 = vld [vmem:[#allocation2 + $0x324] sm:$0xf] }
  0x85   :  { %1212 = vmatpush.bf16.msrb.mxu1 %v1530_v56  ;;  %v1799_v56 = vld [vmem:[#allocation2 + $0x3a8] sm:$0xf0] }
  0x86   :  { %1225 = vmatpush.bf16.msrb.mxu2 %v1594_v19  ;;  %v2103_v19 = vld [vmem:[#allocation2 + $0x424] sm:$0xf] }
  0x87   :  { %1238 = vmatpush.bf16.msrb.mxu3 %v1658_v58  ;;  %1200 = vmatmul.bf16.vlgmr.msrb.gmra.mxu0 %v2198_v18  ;;  %v1943_v18 = vld [vmem:[#allocation2 + $0x4c8] sm:$0xf0] }
  0x88   :  { %1244 = vmatpush.bf16.msra.mxu0 %v1778_v59  ;;  %1213 = vmatmul.bf16.vlgmr.msrb.gmra.mxu1 %v2202_v20  ;;  %v1882_v20 = vor.u32 %v2107_v32, %v1879_v33  ;;  %v1946_v40 = vor.u32 %v2123_v34, %v1943_v18  ;;  %v1927_v58 = vld [vmem:[#allocation2 + $0x4a8] sm:$0xf0]  ;;  %v1738_v59 = vor.u32 %v2071_v52, %v1735_v53 }
  0x89   :  { %1257 = vmatpush.bf16.msra.mxu1 %v1842_v60  ;;  %1226 = vmatmul.bf16.vlgmr.msrb.gmra.mxu2 %v2218_v41  ;;  %v2091_v41 = vld [vmem:[#allocation2 + $0x3c4] sm:$0xf]  ;;  %v1802_v60 = vor.u32 %v2087_v54, %v1799_v56 }
  0x8a   :  { %1270 = vmatpush.bf16.msra.mxu2 %v1906_v61  ;;  %1239 = vmatmul.bf16.vlgmr.msrb.gmra.mxu3 %v2222_v44  ;;  %v1754_v44 = vor.u32 %v2075_v28, %v1751_v29  ;;  %v1818_v35 = vor.u32 %v2091_v41, %v1815_v31  ;;  %v1866_v61 = vor.u32 %v2103_v19, %v1863_v57  ;;  %v195_v29 = vld [vmem:[%s2258_s2] sm:$0x3] }
  0x8b   :  { %1283 = vmatpush.bf16.msra.mxu3 %v1970_v1  ;;  %v1930_v1 = vor.u32 %v2119_v22, %v1927_v58  ;;  %v1914_v28 = vor.u32 %v2115_v17, %v1911_v23  ;;  %v197_v41 = vperm.slane %v195_v29, 0 }
  0x8c   :  { %1245 = vmatpush.bf16.msra.mxu0 %v1770_v7  ;;  %v1730_v7 = vor.u32 %v2069_v62, %v1727_v63 }
  0x8d   :  { %1258 = vmatpush.bf16.msra.mxu1 %v1834_v8  ;;  %v1794_v8 = vor.u32 %v2085_v0, %v1791_v2 }
  0x8e   :  { %1271 = vmatpush.bf16.msra.mxu2 %v1898_v9  ;;  %v1858_v9 = vor.u32 %v2101_v3, %v1855_v4 }
  0x8f   :  { %1284 = vmatpush.bf16.msra.mxu3 %v1962_v13  ;;  %v1922_v13 = vor.u32 %v2117_v5, %v1919_v6 }
  0x90   :  { %1246 = vmatpush.bf16.msra.mxu0 %v1762_v24  ;;  %v1722_v24 = vor.u32 %v2067_v10, %v1719_v11 }
  0x91   :  { %1259 = vmatpush.bf16.msra.mxu1 %v1826_v25  ;;  %v1786_v25 = vor.u32 %v2083_v12, %v1783_v14 }
  0x92   :  { %1272 = vmatpush.bf16.msra.mxu2 %v1890_v27  ;;  %v1850_v27 = vor.u32 %v2099_v15, %v1847_v16 }
  0x93   :  { %1285 = vmatpush.bf16.msra.mxu3 %v1954_v30 }
  0x94   :  { %1247 = vmatpush.bf16.msra.mxu0 %v1754_v44 }
  0x95   :  { %1260 = vmatpush.bf16.msra.mxu1 %v1818_v35 }
  0x96   :  { %1273 = vmatpush.bf16.msra.mxu2 %v1882_v20 }
  0x97   :  { %1286 = vmatpush.bf16.msra.mxu3 %v1946_v40 }
  0x98   :  { %1248 = vmatpush.bf16.msra.mxu0 %v1746_v49 }
  0x99   :  { %1261 = vmatpush.bf16.msra.mxu1 %v1810_v50 }
  0x9a   :  { %1274 = vmatpush.bf16.msra.mxu2 %v1874_v51 }
  0x9b   :  { %1287 = vmatpush.bf16.msra.mxu3 %v1938_v55 }
  0x9c   :  { %1249 = vmatpush.bf16.msra.mxu0 %v1738_v59 }
  0x9d   :  { %1262 = vmatpush.bf16.msra.mxu1 %v1802_v60 }
  0x9e   :  { %1275 = vmatpush.bf16.msra.mxu2 %v1866_v61  ;;  %v198_v61 = vperm.slane %v195_v29, 1 }
  0x9f   :  { %1288 = vmatpush.bf16.msra.mxu3 %v1930_v1 }
  0xa0   :  { %1250 = vmatpush.bf16.msra.mxu0 %v1730_v7 }
  0xa1   :  { %1263 = vmatpush.bf16.msra.mxu1 %v1794_v8 }
  0xa2   :  { %1276 = vmatpush.bf16.msra.mxu2 %v1858_v9 }
  0xa3   :  { %1289 = vmatpush.bf16.msra.mxu3 %v1922_v13 }
  0xa4   :  { %1251 = vmatpush.bf16.msra.mxu0 %v1722_v24  ;;  %v1045_v30 = vpop.f32.mrf.mxu0 }
  0xa5   :  { %1264 = vmatpush.bf16.msra.mxu1 %v1786_v25  ;;  %v1046_v31 = vadd.f32 %v1045_v30, %v197_v41  ;;  %v1058_v32 = vpop.f32.mrf.mxu1 }
  0xa6   :  { %1277 = vmatpush.bf16.msra.mxu2 %v1850_v27 }
  0xa7   :  { %1290 = vmatpush.bf16.msra.mxu3 %v1914_v28  ;;  %1252 = vmatmul.bf16.vlgmr.msra.gmra.mxu0 %v2216_v38  ;;  %v1059_v33 = vadd.f32 %v1058_v32, %v1046_v31 }
  0xa8   :  { %1265 = vmatmul.bf16.vlgmr.msra.gmra.mxu1 %v2220_v42 }
  0xa9   :  { %1278 = vmatmul.bf16.vlgmr.msra.gmra.mxu2 %v2231_v21 }
  0xaa   :  { %1291 = vmatmul.bf16.vlgmr.msra.gmra.mxu3 %v2233_v26 }
  0xac   :  { %v1071_v34 = vpop.f32.mrf.mxu2  ;;  %v1047_v38 = vpop.f32.mrf.mxu0 }
  0xad   :  { %v1072_v18 = vadd.f32 %v1071_v34, %v1059_v33  ;;  %v1084_v44 = vpop.f32.mrf.mxu3  ;;  %v1060_v20 = vpop.f32.mrf.mxu1 }
  0xaf   :  { %v1085_v35 = vadd.f32 %v1084_v44, %v1072_v18 }
  0xb4   :  { %v1073_v42 = vpop.f32.mrf.mxu2 }
  0xb5   :  { %v1086_v36 = vpop.f32.mrf.mxu3 }
  0xc4   :  { %v1097_v21 = vpop.f32.mrf.mxu0 }
  0xc5   :  { %v1098_v37 = vadd.f32 %v1097_v21, %v1085_v35  ;;  %v1110_v26 = vpop.f32.mrf.mxu1 }
  0xc7   :  { %v1111_v39 = vadd.f32 %v1110_v26, %v1098_v37 }
  0xcc   :  { %v1123_v40 = vpop.f32.mrf.mxu2  ;;  %v1099_v47 = vpop.f32.mrf.mxu0 }
  0xcd   :  { %v1124_v43 = vadd.f32 %v1123_v40, %v1111_v39  ;;  %v1136_v45 = vpop.f32.mrf.mxu3  ;;  %v1112_v48 = vpop.f32.mrf.mxu1 }
  0xcf   :  { %v1137_v46 = vadd.f32 %v1136_v45, %v1124_v43 }
  0xd4   :  { %v1125_v49 = vpop.f32.mrf.mxu2 }
  0xd5   :  { %v1138_v50 = vpop.f32.mrf.mxu3 }
  0xe4   :  { %v1149_v51 = vpop.f32.mrf.mxu0 }
  0xe5   :  { %v1150_v52 = vadd.f32 %v1149_v51, %v1137_v46  ;;  %v1162_v53 = vpop.f32.mrf.mxu1 }
  0xe7   :  { %v1163_v54 = vadd.f32 %v1162_v53, %v1150_v52 }
  0xec   :  { %v1175_v55 = vpop.f32.mrf.mxu2  ;;  %v1151_v19 = vpop.f32.mrf.mxu0 }
  0xed   :  { %v1188_v56 = vpop.f32.mrf.mxu3  ;;  %v1164_v57 = vpop.f32.mrf.mxu1  ;;  %v1176_v0 = vadd.f32 %v1175_v55, %v198_v61 }
  0xef   :  { %v1189_v3 = vadd.f32 %v1188_v56, %v1176_v0 }
  0xf4   :  { %v1177_v22 = vpop.f32.mrf.mxu2 }
  0xf5   :  { %v1190_v58 = vpop.f32.mrf.mxu3 }
 0x104   :  { %v1201_v59 = vpop.f32.mrf.mxu0 }
 0x105   :  { %v1214_v60 = vpop.f32.mrf.mxu1  ;;  %v1202_v6 = vadd.f32 %v1201_v59, %v1189_v3 }
 0x107   :  { %v1215_v7 = vadd.f32 %v1214_v60, %v1202_v6 }
 0x10c   :  { %v1227_v62 = vpop.f32.mrf.mxu2  ;;  %v1203_v1 = vpop.f32.mrf.mxu0 }
 0x10d   :  { %v1240_v63 = vpop.f32.mrf.mxu3  ;;  %v1216_v2 = vpop.f32.mrf.mxu1  ;;  %v1228_v8 = vadd.f32 %v1227_v62, %v1215_v7 }
 0x10f   :  { %v1241_v9 = vadd.f32 %v1240_v63, %v1228_v8 }
 0x114   :  { %v1229_v4 = vpop.f32.mrf.mxu2 }
 0x115   :  { %v1242_v5 = vpop.f32.mrf.mxu3 }
 0x124   :  { %v1253_v10 = vpop.f32.mrf.mxu0 }
 0x125   :  { %v1266_v11 = vpop.f32.mrf.mxu1  ;;  %v1254_v12 = vadd.f32 %v1253_v10, %v1241_v9 }
 0x127   :  { %v1267_v13 = vadd.f32 %v1266_v11, %v1254_v12 }
 0x12c   :  { %v1279_v14 = vpop.f32.mrf.mxu2  ;;  %v1255_v17 = vpop.f32.mrf.mxu0 }
 0x12d   :  { %v1280_v15 = vadd.f32 %v1279_v14, %v1267_v13  ;;  %v1292_v16 = vpop.f32.mrf.mxu3  ;;  %v1268_v23 = vpop.f32.mrf.mxu1 }
 0x12f   :  { %v1293_v24 = vadd.f32 %v1292_v16, %v1280_v15 }
 0x131   :  { %v1296_v25 = vmax.f32 %v1163_v54, %v1293_v24 }
 0x133   :  { %1297 = vmax.xlane.f32.xlu0 %v1296_v25 }
 0x134   :  { %v1281_v27 = vpop.f32.mrf.mxu2 }
 0x135   :  { %v1294_v28 = vpop.f32.mrf.mxu3 }
 0x1a6   :  { %v1298_v29 = vpop.xlane.xlu0 %1297 }
 0x1a7   :  { %v1299_v41 = vsub.f32 %v1163_v54, %v1298_v29  ;;  %v1300_v30 = vsub.f32 %v1293_v24, %v1298_v29 }
 0x1a9   :  { %v1301_v31 = vmul.f32 1.442695, %v1299_v41  ;;  %v1303_v32 = vmul.f32 1.442695, %v1300_v30 }
 0x1ab   :  { %2134 = vpow2.f32 %v1301_v31 }
 0x1ac   :  { %2136 = vpow2.f32 %v1303_v32 }
 0x1b1   :  { %v2135_v33 = vpop.eup %2134 }
 0x1b2   :  { %v2137_v34 = vpop.eup %2136 }
 0x1b3   :  { %v1305_v18 = vadd.f32 %v2137_v34, %v2135_v33 }
 0x1b5   :  { %1306 = vadd.xlane.f32.xlu0 %v1305_v18 }
 0x228   :  { %v1307_v44 = vpop.xlane.xlu0 %1306 }
 0x229   :  { %2138 = vrcp.f32 %v1307_v44  ;;  %v1319_v42 = vand.u32 2147483648, %v1307_v44  ;;  %v1317_v21 = vand.u32 2147483647, %v1307_v44  ;;  %vm1313_vm1 = vweird.f32 %v1307_v44 }
 0x22b   :  { %v1320_v26 = vor.u32 1.1754944e-38, %v1319_v42  ;;  %vm1318_vm3 = vcmp.eq.f32.partialorder %v1317_v21, 8.507059e+37 }
 0x22f   :  { %v2139_v35 = vpop.eup %2138 }
 0x230   :  { %v1309_v38 = vmul.f32 %v2139_v35, %v1307_v44  ;;  %vm1314_vm0 = vweird.f32 %v2139_v35 }
 0x231   :  { %vm1315_vm2 = vmor %vm1313_vm1, %vm1314_vm0 }
 0x232   :  { %v1310_v20 = vsub.f32 1.0, %v1309_v38 }
 0x234   :  { %v1311_v36 = vmul.f32 %v2139_v35, %v1310_v20 }
 0x236   :  { %v1312_v37 = vadd.f32 %v2139_v35, %v1311_v36 }
 0x238   :  { %v1316_v39 = vsel %vm1315_vm2, %v2139_v35, %v1312_v37 }
 0x239   :  { %v1321_v40 = vsel %vm1318_vm3, %v1320_v26, %v1316_v39 }
 0x23a   :  { %v1322_v43 = vmul.f32 %v2135_v33, %v1321_v40  ;;  %v1323_v45 = vmul.f32 %v2137_v34, %v1321_v40 }
 0x23c   :  { %1324 = vst [vmem:[%s2259_s3] sm:$0xff] %v1322_v43 }
 0x23d   :  { %1325 = vst [vmem:[%s2259_s3 + $0x8] sm:$0xff] %v1323_v45 }
 0x23e   :  { %1330 = vsyncpa [#allocation3], 1 }

</bundles_post_ra>
